<compile_context>
chip_gen: v7x
topology: tpu7x:2x2x1
jax: 0.10.0
libtpu: 0.0.40
codegen_flags: <defaults>
</compile_context>

<pallas_src>
import functools

import jax
import jax.numpy as jnp
from jax.experimental import pallas as pl
from jax.experimental.pallas import tpu as pltpu

NUM_EMBED = 50  # nn.Embedding(50, num_pos_feats)


def _pos_embed_kernel(tab_ref, out_ref, *, W):
    # tab_ref: (1, tile_f, N)  transposed table slice (col table on half 0, row on half 1)
    # out_ref: (1, tile_f, tile_hw)  one tile of the (2, F, H*W) positional slab
    i = pl.program_id(0)            # 0 -> x/col half, 1 -> y/row half
    j = pl.program_id(1)            # lane (flattened-spatial) tile index
    N = tab_ref.shape[-1]
    tile_hw = out_ref.shape[-1]

    # Flattened spatial index s = y*W + x for this lane tile, at shape (1, tile_hw).
    s = jax.lax.broadcasted_iota(jnp.int32, (1, tile_hw), 1) + j * tile_hw
    # floor(s / W) in f32 is exact here: s < 2^24 and the gap to the next integer is
    # >= 1/W >= 1/50, far above f32 rounding at these magnitudes.
    y_idx = jnp.floor(s.astype(jnp.float32) / W).astype(jnp.int32)   # s // W
    x_idx = s - W * y_idx                                            # s %  W
    idx = jnp.where(i == 0, x_idx, y_idx)                            # (1, tile_hw) int32

    # One-hot per spatial column via integer broadcast-compare against row ids.
    k = jax.lax.broadcasted_iota(jnp.int32, (N, tile_hw), 0)
    onehot = (idx == k).astype(jnp.float32)                          # (N, tile_hw)

    table = tab_ref[0]                                               # (tile_f, N) f32
    out_ref[0] = jnp.dot(
        table,
        onehot,
        preferred_element_type=jnp.float32,
        precision=jax.lax.Precision.HIGHEST,   # exact f32 gather of the embedding rows
    ).astype(out_ref.dtype)


def _choose_lane_tile(hw, quantum=128, target=512):
    """Largest multiple-of-`quantum` divisor of hw that is <= target; hw itself if none."""
    if hw <= target:
        return hw
    t = (target // quantum) * quantum
    while t >= quantum:
        if hw % t == 0:
            return t
        t -= quantum
    return hw  # e.g. 50*50 = 2500: not 128-divisible -> full-HW (= full dim) block


def _choose_sublane_tile(f, want_tiles, quantum=8):
    """Multiple-of-8 divisor of f giving roughly `want_tiles` tiles; f if impossible."""
    if want_tiles <= 1 or f % quantum != 0 or f <= quantum:
        return f
    t = max(quantum, (f // want_tiles) // quantum * quantum)
    while t > quantum:
        if f % t == 0:
            return t
        t -= quantum
    return quantum


def position_embedding_learned(x, col_weight, row_weight):
    """x: (B, C, H, W). Returns pos: (B, 2F, H, W), matching the PyTorch module."""
    B = x.shape[0]
    H, W = x.shape[-2], x.shape[-1]
    N, F = col_weight.shape
    assert H <= N and W <= N, "spatial dims must be <= 50 (nn.Embedding(50, F))"

    HW = H * W
    tile_hw = _choose_lane_tile(HW)
    n_hw = HW // tile_hw
    # Target ~8 total grid steps so output writeback pipelines behind compute while
    # the ~0.35us per-step overhead stays negligible.
    want_f_tiles = max(1, -(-8 // (2 * n_hw)))  # ceil(8 / (2*n_hw))
    tile_f = _choose_sublane_tile(F, want_f_tiles)
    n_f = F // tile_f

    # Tiny one-off weight prep (~2*N*F*4 bytes): stack the transposed tables so each
    # grid step streams exactly one (tile_f, N) slice and the kernel never transposes.
    tables_t = jnp.stack([col_weight.T, row_weight.T])   # (2, F, N)

    pos_halves = pl.pallas_call(
        functools.partial(_pos_embed_kernel, W=W),
        out_shape=jax.ShapeDtypeStruct((2, F, HW), col_weight.dtype),
        grid=(2, n_hw, n_f),
        in_specs=[pl.BlockSpec((1, tile_f, N), lambda i, j, k: (i, k, 0))],
        out_specs=pl.BlockSpec((1, tile_f, tile_hw), lambda i, j, k: (i, k, j)),
        compiler_params=pltpu.CompilerParams(
            # All steps are independent; v7x's two TensorCores split the grid.
            dimension_semantics=("parallel", "parallel", "parallel")
        ),
    )(tables_t)

    # Free metadata reshape to NCHW (slab is contiguous: [col-half F rows | row-half F rows]).
    pos = pos_halves.reshape(1, 2 * F, H, W)
    # Keep the batch broadcast outside the kernel. NOTE: consumers should keep this
    # lazy/fused; materializing B copies in HBM would dwarf the kernel itself.
    return jnp.broadcast_to(pos, (B, 2 * F, H, W))


def _reference(x, col_weight, row_weight):
    B = x.shape[0]
    H, W = x.shape[-2], x.shape[-1]
    F = col_weight.shape[1]
    x_emb = col_weight[:W]                      # (W, F)
    y_emb = row_weight[:H]                      # (H, F)
    pos = jnp.concatenate(
        [
            jnp.broadcast_to(x_emb[None, :, :], (H, W, F)),
            jnp.broadcast_to(y_emb[:, None, :], (H, W, F)),
        ],
        axis=-1,
    )                                            # (H, W, 2F)
    pos = jnp.transpose(pos, (2, 0, 1))[None]    # (1, 2F, H, W)
    return jnp.broadcast_to(pos, (B,) + pos.shape[1:])


if __name__ == "__main__":
    key = jax.random.PRNGKey(0)
    k_x, k_col, k_row = jax.random.split(key, 3)

    B, C, H, W = 2, 4, 16, 16
    num_pos_feats = 32  # small-scale stand-in for the default 256

    x = jax.random.normal(k_x, (B, C, H, W), dtype=jnp.float32)
    # nn.init.uniform_ -> U[0, 1)
    col_weight = jax.random.uniform(k_col, (NUM_EMBED, num_pos_feats), dtype=jnp.float32)
    row_weight = jax.random.uniform(k_row, (NUM_EMBED, num_pos_feats), dtype=jnp.float32)

    pos = position_embedding_learned(x, col_weight, row_weight)
    pos = jax.block_until_ready(pos)

    ref = _reference(x, col_weight, row_weight)
    assert pos.shape == (B, 2 * num_pos_feats, H, W), pos.shape
    # HIGHEST-precision one-hot gather is exact -> tight tolerance.
    assert jnp.allclose(pos, ref, atol=1e-6), "mismatch vs reference"

    print("KERNEL_OK")
</pallas_src>

<mosaic_0001>
module attributes {stable_mosaic.version = 11 : i64} {
  func.func @_pos_embed_kernel(%arg0: i32, %arg1: i32, %arg2: i32, %arg3: memref<1x8x50xf32, #tpu.memory_space<vmem>>, %arg4: memref<1x8x256xf32, #tpu.memory_space<vmem>>) attributes {dimension_semantics = [#tpu.dimension_semantics<parallel>, #tpu.dimension_semantics<parallel>, #tpu.dimension_semantics<parallel>], iteration_bounds = array<i64: 2, 1, 4>, scalar_prefetch = 0 : i64, scratch_operands = 0 : i64, tpu.core_type = #tpu.core_type<tc>, window_params = [{transform_indices = @transform_0, window_bounds = array<i64: 1, 8, 50>}, {transform_indices = @transform_1, window_bounds = array<i64: 1, 8, 256>}]} {
    %0 = tpu.iota {dimensions = array<i32: 1>} : vector<1x256xi32>
    %c256_i32 = arith.constant 256 : i32
    %1 = arith.muli %arg1, %c256_i32 : i32
    %2 = vector.broadcast %1 : i32 to vector<1x256xi32>
    %3 = arith.addi %0, %2 : vector<1x256xi32>
    %4 = arith.sitofp %3 : vector<1x256xi32> to vector<1x256xf32>
    %cst = arith.constant 1.600000e+01 : f32
    %5 = vector.broadcast %cst : f32 to vector<1x256xf32>
    %6 = arith.divf %4, %5 : vector<1x256xf32>
    %7 = math.floor %6 : vector<1x256xf32>
    %8 = arith.fptosi %7 : vector<1x256xf32> to vector<1x256xi32>
    %c16_i32 = arith.constant 16 : i32
    %9 = vector.broadcast %c16_i32 : i32 to vector<1x256xi32>
    %10 = arith.muli %9, %8 : vector<1x256xi32>
    %11 = arith.subi %3, %10 : vector<1x256xi32>
    %c0_i32 = arith.constant 0 : i32
    %12 = arith.cmpi eq, %arg0, %c0_i32 : i32
    %13 = arith.select %12, %11, %8 : vector<1x256xi32>
    %14 = tpu.iota {dimensions = array<i32: 0>} : vector<50x256xi32>
    %15 = vector.broadcast %13 : vector<1x256xi32> to vector<50x256xi32>
    %16 = arith.cmpi eq, %15, %14 : vector<50x256xi32>
    %17 = arith.extui %16 : vector<50x256xi1> to vector<50x256xi32>
    %18 = arith.sitofp %17 : vector<50x256xi32> to vector<50x256xf32>
    %c0 = arith.constant 0 : index
    %c0_0 = arith.constant 0 : index
    %c0_1 = arith.constant 0 : index
    %19 = vector.load %arg3[%c0, %c0_0, %c0_1] : memref<1x8x50xf32, #tpu.memory_space<vmem>>, vector<1x8x50xf32>
    %20 = vector.shape_cast %19 : vector<1x8x50xf32> to vector<8x50xf32>
    %cst_2 = arith.constant dense<0.000000e+00> : vector<8x256xf32>
    %21 = tpu.matmul %20, %18, %cst_2 {dimension_numbers = #tpu.dot_dimension_numbers<[1], [0], [0], [1], [0, 0, 1, 1], [], []>, precision = #tpu.contract_precision<fp32>} : vector<8x50xf32>, vector<50x256xf32>, vector<8x256xf32> -> vector<8x256xf32>
    %c0_3 = arith.constant 0 : index
    %c0_4 = arith.constant 0 : index
    %c0_5 = arith.constant 0 : index
    %22 = vector.load %arg4[%c0_3, %c0_4, %c0_5] : memref<1x8x256xf32, #tpu.memory_space<vmem>>, vector<1x8x256xf32>
    %23 = vector.shape_cast %22 : vector<1x8x256xf32> to vector<8x256xf32>
    %24 = vector.shape_cast %21 : vector<8x256xf32> to vector<1x8x256xf32>
    tpu.vector_store %arg4[%c0_3, %c0_4, %c0_5], %24 {strides = array<i32>} : memref<1x8x256xf32, #tpu.memory_space<vmem>>, vector<1x8x256xf32>,
    return
  }
  func.func @transform_0(%arg0: i32, %arg1: i32, %arg2: i32) -> (i32, i32, i32) {
    %c0_i32 = arith.constant 0 : i32
    %c0_i32_0 = arith.constant 0 : i32
    return %arg0, %arg2, %c0_i32 : i32, i32, i32
  }
  func.func @transform_1(%arg0: i32, %arg1: i32, %arg2: i32) -> (i32, i32, i32) {
    %c0_i32 = arith.constant 0 : i32
    return %arg0, %arg2, %arg1 : i32, i32, i32
  }
}

</mosaic_0001>

<bundles_post_ra>
// kernel: tpu_custom_call.1
= control target key start
LH: loop header
LB: loop body
LE: loop exit
PB: predicated region body
PF: predicated region fallthrough
CT: control target
= control target key end

     0   :  { %6 = vsyncpa [#allocation3], 0  ;;  %s1816_s0 = inlined_call_operand.hbm [shape: f32[2,32,50], index: 0, kind: input, shape index: {}]   ;;  %s1817_s1 = inlined_call_operand.hbm [shape: f32[2,32,256], index: 1, kind: output, shape index: {}]  }
   0x1   :  { %8 = vsyncpa [#allocation3 + $0x1], 0 }
   0x2   :  { %9 = vsyncpa [#allocation4], 0 }
   0x3   :  { %11 = vsyncpa [#allocation4 + $0x1], 0  ;;  %s1363_s6 = smov 0   ;;  %s1365_s7 = smov 0  }
   0x4   :  { %s1367_s8 = smov 0   ;;  %s1369_s9 = smov 0  }
   0x5   :  { %s1371_s10 = smov 0   ;;  %s1373_s11 = smov 0  }
   0x6   :  { %s1375_s12 = smov 0   ;;  %s1377_s13 = smov 0  }
   0x7 LB: > { %s981_s14 = sadd.s32 4294967295, %s1347_s13   ;;  %s982_s15 = sadd.s32 4294967294, %s1347_s13   ;;  %s1347_s13 = sphi %s1377_s13, %s17_s13   ;;  %s1343_s12 = sphi %s1375_s12, %s1848_s12   ;;  %s1339_s11 = sphi %s1373_s11, %s1847_s11   ;;  %s1335_s10 = sphi %s1371_s10, %s1846_s10   ;;  %s1331_s9 = sphi %s1369_s9, %s1845_s9   ;;  %s1327_s8 = sphi %s1367_s8, %s1844_s8   ;;  %s1323_s7 = sphi %s1365_s7, %s1843_s7   ;;  %s1319_s6 = sphi %s1363_s6, %s1842_s6  }
   0x8   : > { %s29_s16 = sadd.s32 1, %s1339_s11  ;;  %s36_s17 = sadd.s32 1, %s1343_s12 }
   0x9   : > { %p30_p0 = scmp.ge.s32.totalorder %s29_s16, 4  ;;  %s45_s18 = sadd.s32 1, %s1327_s8 }
   0xa   : > { %p52_p1 = scmp.ne.s32.totalorder %s1327_s8, %s1323_s7  ;;  %p53_p2 = scmp.eq.s32.totalorder %s1347_s13, 0 }
   0xb   : > { %s1850_s16 = smov (%p30_p0, %s29_s16), 0  ;;  %s1852_s17 = smov (!%p30_p0, %s36_s17), %s1343_s12 }
   0xc   : > { %s41_s19 = ssub.s32 %s1339_s11, %s1850_s16  ;;  %p1416_p3 = por %p53_p2, %p52_p1 }
   0xd   : > { %p38_p4 = scmp.ge.s32.totalorder %s1852_s17, 2  ;;  %p58_p5 = scmp.ne.s32.totalorder %s1323_s7, %s1319_s6 }
   0xe   : > { %p59_p6 = scmp.eq.s32.totalorder %s981_s14, 0  ;;  %p86_p7 = scmp.eq.s32.totalorder %s981_s14, 7 }
   0xf   : > { %s1854_s17 = smov (%p38_p4, %s1852_s17), 0  ;;  %p92_p10 = scmp.eq.s32.totalorder %s982_s15, 7 }
  0x10   : > { %p1424_p8 = por %p59_p6, %p58_p5  ;;  %p1428_p9 = por %p86_p7, %p52_p1 }
  0x11   : > { %s40_s23 = ssub.s32 %s1343_s12, %s1854_s17  ;;  %p1434_p12 = por %p92_p10, %p58_p5 }
  0x12   : > { %s1821_s22 = scalar_select %p1428_p9, 1, 0 }
  0x13   : > { %s42_s24 = sor.u32 %s41_s19, %s40_s23  ;;  %p1151_p13 = scmp.lt.s32.totalorder %s1347_s13, 8 }
  0x14   : > { %p43_p11 = scmp.eq.s32.totalorder %s42_s24, 0  ;;  %s112_s26 = sand.u32 1, %s1327_s8  }
  0x15   : > { %s1822_s25 = scalar_select %p1434_p12, 1, 0 }
  0x16   : > { %s1441_s27 = scalar_select %p43_p11, %s1327_s8, %s45_s18  }
  0x17   : > { %s985_s28 = sshll.u32 %s112_s26, 3  ;;  %s986_s29 = sshll.u32 %s1343_s12, 2 }
  0x18   : > { %s121_s30 = sadd.s32 %s1339_s11, %s986_s29  ;;  %s116_s2 = scalar_lea.vmem [#allocation2], %s985_s28 }
  0x19   : > { %s125_s3 = sshll.u32 %s116_s2, 4  ;;  %s987_s4 = sshll.u32 %s121_s30, 7  ;;  %s1445_s3 = int_to_ptr.vmem [resolvable:$true] %s125_s3 }
  0x1a   : > { %s1450_s15 = scalar_lea.hbm %s1816_s0, %s987_s4  ;;  %p1454_p0 = pnand %p1151_p13, %p1416_p3 }
  0x1b   : > { %s113_s19 = scalar_lea.sflag [#allocation3], %s112_s26  ;;  %s1219_s23 = scalar_lea.hbm %s1450_s15, 128 }
  0x1c   : > { %p1220_p4 = scmp.ne.s32.totalorder %s1450_s15, %s1219_s23  ;;  %p1221_p5 = pneg %p1454_p0 }
  0x1d   : > { %s1224_s28 = scalar_lea.hbm %s1816_s0, 1024  ;;  %p1225_p3 = scmp.lt.u32.totalorder %s1450_s15, %s1816_s0 }
  0x1e   : > { %p1222_p6 = pnand %p1221_p5, %p1220_p4  ;;  %p1226_p10 = scmp.lt.u32.totalorder %s1224_s28, %s1219_s23 }
  0x1f   : > { %p1228_p13 = scmp.lt.u32.totalorder %s1219_s23, %s1450_s15 }
  0x20   : > { %p1223_p7 = pneg %p1222_p6  ;;  %p1227_p11 = por %p1226_p10, %p1225_p3 }
  0x22   : > { %p1229_p1 = por %p1228_p13, %p1227_p11 }
  0x24   : > { %p1230_p2 = pnand %p1229_p1, %p1223_p7 }
  0x26   : > { %1233 = shalt.err (!%p1230_p2)
}
  0x27   : > { %s1234_s26 = scalar_lea.vmem %s1445_s3, 128  ;;  %s1349_s2 = smov [#allocation2]  }
  0x28   : > { %p1235_p4 = scmp.ne.s32.totalorder %s1445_s3, %s1234_s26  ;;  %s1239_s4 = sshll.u32 %s1349_s2, 4  ;;  %s1240_s4 = int_to_ptr.vmem [resolvable:$false] %s1239_s4 }
  0x29   : > { %s1241_s5 = scalar_lea.vmem %s1240_s4, 256  ;;  %p1242_p9 = scmp.lt.s32.totalorder %s1445_s3, %s1240_s4 }
  0x2a   : > { %p1237_p6 = pnand %p1235_p4, %p1221_p5  ;;  %p1243_p3 = scmp.lt.s32.totalorder %s1241_s5, %s1234_s26 }
  0x2c   : > { %p1238_p12 = pneg %p1237_p6  ;;  %p1244_p10 = por %p1243_p3, %p1242_p9 }
  0x2e   : > { %p1245_p11 = pnand %p1244_p10, %p1238_p12 }
  0x30   : > { %1248 = shalt.err (!%p1245_p11)
}
  0x31   : > { %1146 = dma.hbm_to_vmem [thread:$0]  (!%p1454_p0), %s1450_s15, 128, %s1445_s3, %s113_s19  }
  0x32   : > { %p1824_p1 = scmp.lt.s32.totalorder %s1347_s13, 9  ;;  %p1825_p2 = scmp.ge.s32.totalorder %s1347_s13, 1 }
  0x34   : > { %p131_p5 = pnand %p1825_p2, %p1824_p1 }
  0x35   : > { %s1490_s14 = sand.u32 (!%p131_p5), 1, %s1323_s7  }
  0x36   : > { %134 = sbr.rel (%p131_p5) target bundleno = 359 (0x167), region = 24  ;;  %s989_s23 = sshll.u32 (!%p131_p5), %s1490_s14, 3 }
  0x37   : > { %s137_s20 = scalar_lea.sflag (!%p131_p5), [#allocation3], %s1490_s14  ;;  %s140_s24 = scalar_lea.vmem (!%p131_p5), [#allocation2], %s989_s23 }
  0x3d   : > { %1310 = dma.done.wait (%p1424_p8), %s137_s20, 128  }
  0x3e   : > { %1312 = vsyncadd (%p1424_p8), %s137_s20, 4294967168  ;;  %v160_v0 = vlaneseq  ;;  %v1350_v1 = vmov 0.0   ;;  %p180_p9 = scmp.eq.s32.totalorder %s1335_s10, 0  ;;  %vm237_vm0 = vcmask 408576   ;;  %v236_v7 = vld [vmem:[%s140_s24] sm:$0xff]  ;;  %vm241_vm12 = vcmask 1041408  }
  0x3f   : > { %326 = vmatprep.mubr.f32.mxu1 %v1350_v1  ;;  %659 = vmatprep.mubr.f32.mxu0 %v1350_v1  ;;  %v239_v10 = vsel %vm237_vm0, %v236_v7, 0  ;;  %v1351_v44 = vmov 1.0|1.0   ;;  %s990_s21 = sshll.u32 %s1490_s14, 4  ;;  %s1048_s15 = sshll.u32 %s1331_s9, 1 }
  0x40   : > { %v161_v2 = vand.u32 127, %v160_v0  ;;  %s181_s3 = scalar_select %p180_p9, 1, 0  ;;  %v1501_v11 = vand.u32 4294901760, %v239_v10  ;;  %v187_v14 = vshrl.u32 %v160_v0, 7 }
  0x41   : > { %s1049_s18 = sshll.u32 %s1335_s10, 3  ;;  %s158_s29 = scalar_lea.vmem [#allocation5], %s990_s21 }
  0x42   : > { %v162_v3 = vadd.s32 128, %v161_v2  ;;  %v167_v4 = vcvt.s32.f32 %v161_v2  ;;  %v1504_v15 = vsub.f32 %v239_v10, %v1501_v11  ;;  %v182_v17 = vstv %s181_s3  ;;  %s886_s19 = sadd.s32 %s1049_s18, %s1048_s15  ;;  %s890_s30 = sshll.u32 %s158_s29, 4  ;;  %s1764_s30 = int_to_ptr.vmem [resolvable:$true] %s890_s30 }
  0x43   : > { %vm1507_vm1 = vcmp.eq.s32.totalorder %v182_v17, 1  ;;  %v188_v23 = vadd.s32 8, %v187_v14  ;;  %v189_v24 = vadd.s32 16, %v187_v14  ;;  %v190_v25 = vadd.s32 24, %v187_v14  ;;  %s1050_s28 = sshll.u32 %s886_s19, 7  ;;  %s872_s9 = scalar_lea.sflag [#allocation4], %s1490_s14 }
  0x44   : > { %v168_v5 = vcvt.s32.f32 %v162_v3  ;;  %v170_v6 = vmul.f32 0.0625, %v167_v4  ;;  %v329_v21 = vand.u32 4294901760, %v1504_v15  ;;  %v1511_v28 = vadd.s32 32, %v187_v14  ;;  %s1762_s4 = scalar_lea.hbm %s1817_s1, %s1050_s28  ;;  %s1249_s10 = scalar_lea.vmem %s1764_s30, 256 }
  0x45   : > { %v1513_v29 = vadd.s32 40, %v187_v14  ;;  %v1519_v32 = vadd.s32 48, %v187_v14  ;;  %p1250_p8 = scmp.ne.s32.totalorder %s1764_s30, %s1249_s10  ;;  %p1840_p12 = scmp.ne.s32.totalorder %s1821_s22, 0 }
  0x46   : > { %v171_v8 = vmul.f32 0.0625, %v168_v5  ;;  %v172_v9 = vfloor.f32 %v170_v6  ;;  %v1524_v33 = vsub.f32 %v1504_v15, %v329_v21  ;;  %s1352_s5 = smov [#allocation5]  }
  0x47   : > { %p1251_p0 = pnand %p1250_p8, %p1840_p12  ;;  %s1253_s23 = sshll.u32 %s1352_s5, 4  ;;  %s1254_s23 = int_to_ptr.vmem [resolvable:$false] %s1253_s23 }
  0x48   : > { %v173_v12 = vfloor.f32 %v171_v8  ;;  %v1135_v13 = vtrunc.f32 %v172_v9  ;;  %v331_v49 = vand.u32 4294901760, %v1524_v33  ;;  %s1255_s20 = scalar_lea.vmem %s1254_s23, 512  ;;  %p1256_p13 = scmp.lt.s32.totalorder %s1764_s30, %s1254_s23 }
  0x49   : > { %p1252_p7 = pneg %p1251_p0  ;;  %p1257_p4 = scmp.lt.s32.totalorder %s1255_s20, %s1249_s10 }
  0x4a   : > { %v1137_v16 = vtrunc.f32 %v173_v12  ;;  %v1136_v18 = vcvt.f32.s32 %v1135_v13 }
  0x4b   : > { %p1258_p6 = por %p1257_p4, %p1256_p13 }
  0x4c   : > { %v1138_v19 = vcvt.f32.s32 %v1137_v16  ;;  %v176_v20 = vmul.u32 16, %v1136_v18 }
  0x4d   : > { %p1259_p3 = pnand %p1258_p6, %p1252_p7 }
  0x4e   : > { %v177_v26 = vmul.u32 16, %v1138_v19  ;;  %v178_v27 = vsub.s32 %v161_v2, %v176_v20 }
  0x50   : > { %v179_v30 = vsub.s32 %v162_v3, %v177_v26  ;;  %v1517_v31 = vsel %vm1507_vm1, %v178_v27, %v1136_v18 }
  0x51   : > { %vm194_vm2 = vcmp.eq.s32.totalorder %v1517_v31, %v187_v14  ;;  %vm196_vm3 = vcmp.eq.s32.totalorder %v1517_v31, %v188_v23  ;;  %vm198_vm4 = vcmp.eq.s32.totalorder %v1517_v31, %v189_v24  ;;  %vm200_vm5 = vcmp.eq.s32.totalorder %v1517_v31, %v190_v25 }
  0x52   : > { %v185_v34 = vsel %vm1507_vm1, %v179_v30, %v1138_v19  ;;  %v991_v35 = vsel %vm194_vm2, 1.0, %v1350_v1  ;;  %v993_v36 = vsel %vm196_vm3, 1.0, %v1350_v1  ;;  %v995_v37 = vsel %vm198_vm4, 1.0, %v1350_v1  ;;  %vm1537_vm8 = vmpackc.low %vm196_vm3, %vm194_vm2 }
  0x53   : > { %vm195_vm6 = vcmp.eq.s32.totalorder %v185_v34, %v187_v14  ;;  %vm197_vm7 = vcmp.eq.s32.totalorder %v185_v34, %v188_v23  ;;  %v1541_v39 = vsub.f32 %v991_v35, %v991_v35  ;;  %v1543_v40 = vsub.f32 %v993_v36, %v993_v36  ;;  %vm1596_vm14 = vmpackc.low %vm200_vm5, %vm198_vm4 }
  0x54   : > { %v992_v41 = vsel %vm195_vm6, 1.0, %v1350_v1  ;;  %v994_v42 = vsel %vm197_vm7, 1.0, %v1350_v1  ;;  %vm1547_vm9 = vmpackc.low %vm197_vm7, %vm195_vm6  ;;  %vm199_vm10 = vcmp.eq.s32.totalorder %v185_v34, %v189_v24  ;;  %vm201_vm11 = vcmp.eq.s32.totalorder %v185_v34, %v190_v25 }
  0x55   : > { %1054 = vmatprep.subr.msk.bf16.mxu1 %vm1547_vm9, %v1351_v44  ;;  %v1554_v45 = vsub.f32 %v992_v41, %v992_v41  ;;  %1090 = vmatprep.subr.msk.bf16.mxu0 %vm1547_vm9, %v1351_v44  ;;  %v346_v46 = vand.u32 4294901760, %v1541_v39  ;;  %v358_v47 = vand.u32 4294901760, %v1543_v40  ;;  %vm1561_vm13 = vmpackc.low %vm201_vm11, %vm199_vm10  ;;  %v996_v50 = vsel %vm199_vm10, 1.0, %v1350_v1 }
  0x56   : > { %1056 = vmatpush1.bf16.msk.msra.mxu1 %vm1537_vm8, %v1351_v44  ;;  %1092 = vmatpush1.bf16.msk.msra.mxu0 %vm1537_vm8, %v1351_v44  ;;  %v998_v51 = vsel %vm201_vm11, 1.0, %v1350_v1  ;;  %v997_v52 = vsel %vm200_vm5, 1.0, %v1350_v1  ;;  %v1577_v53 = vsub.f32 %v995_v37, %v995_v37  ;;  %v1579_v54 = vsub.f32 %v994_v42, %v994_v42 }
  0x57   : > { %v347_v55 = vsub.f32 %v1541_v39, %v346_v46  ;;  %v359_v56 = vsub.f32 %v1543_v40, %v358_v47  ;;  %1058 = vmatprep.subr.msk.bf16.mxu1 %vm1561_vm13, %v1351_v44  ;;  %v1590_v57 = vsub.f32 %v996_v50, %v996_v50  ;;  %v1600_v59 = vsub.f32 %v998_v51, %v998_v51 }
  0x58   : > { %1094 = vmatprep.subr.msk.bf16.mxu0 %vm1561_vm13, %v1351_v44  ;;  %v1605_v60 = vsub.f32 %v997_v52, %v997_v52  ;;  %vm203_vm15 = vcmp.eq.s32.totalorder %v185_v34, %v1511_v28  ;;  %vm205_vm0 = vcmp.eq.s32.totalorder %v185_v34, %v1513_v29  ;;  %v370_v63 = vand.u32 4294901760, %v1577_v53 }
  0x59   : > { %v348_v61 = vand.u32 4294901760, %v347_v55  ;;  %v360_v62 = vand.u32 4294901760, %v359_v56  ;;  %v1000_v0 = vsel %vm203_vm15, 1.0, %v1350_v1  ;;  %vm1611_vm1 = vmpackc.low %vm205_vm0, %vm203_vm15  ;;  %v1002_v4 = vsel %vm205_vm0, 1.0, %v1350_v1 }
  0x5a   : > { %1060 = vmatpush1.bf16.msk.msra.mxu1 %vm1596_vm14, %v1351_v44  ;;  %v382_v3 = vand.u32 4294901760, %v1605_v60  ;;  %1096 = vmatpush1.bf16.msk.msra.mxu0 %vm1596_vm14, %v1351_v44  ;;  %v1623_v5 = vsub.f32 %v1000_v0, %v1000_v0  ;;  %vm202_vm2 = vcmp.eq.s32.totalorder %v1517_v31, %v1511_v28  ;;  %vm204_vm3 = vcmp.eq.s32.totalorder %v1517_v31, %v1513_v29 }
  0x5b   : > { %1062 = vmatprep.subr.msk.bf16.mxu1 %vm1611_vm1, %v1351_v44  ;;  %1098 = vmatprep.subr.msk.bf16.mxu0 %vm1611_vm1, %v1351_v44  ;;  %v999_v6 = vsel %vm202_vm2, 1.0, %v1350_v1  ;;  %vm207_vm4 = vcmp.eq.s32.totalorder %v185_v34, %v1519_v32  ;;  %vm206_vm5 = vcmp.eq.s32.totalorder %v1517_v31, %v1519_v32  ;;  %v1001_v7 = vsel %vm204_vm3, 1.0, %v1350_v1  ;;  %vm1640_vm6 = vmpackc.low %vm204_vm3, %vm202_vm2 }
  0x5c   : > { %v1644_v9 = vsub.f32 %v999_v6, %v999_v6  ;;  %v1647_v10 = vsel %vm207_vm4, 1.0, %v1350_v1  ;;  %v1650_v12 = vsel %vm206_vm5, 1.0, %v1350_v1  ;;  %v1652_v13 = vsub.f32 %v1001_v7, %v1001_v7 }
  0x5d   : > { %v246_v14 = vsel %vm241_vm12, %v1647_v10, 0  ;;  %v243_v16 = vsel %vm241_vm12, %v1650_v12, 0  ;;  %v340_v17 = vand.u32 4294901760, %v1554_v45  ;;  %v1659_v18 = vsub.f32 %v1002_v4, %v1002_v4 }
  0x5e   : > { %1064 = vmatpush1.bf16.msk.msra.mxu1 %vm1640_vm6, %v1351_v44  ;;  %v394_v19 = vand.u32 4294901760, %v1644_v9  ;;  %1100 = vmatpush1.bf16.msk.msra.mxu0 %vm1640_vm6, %v1351_v44  ;;  %v1668_v20 = vsub.f32 %v246_v14, %v246_v14  ;;  %v352_v22 = vand.u32 4294901760, %v1579_v54  ;;  %v406_v23 = vand.u32 4294901760, %v1652_v13 }
  0x5f   : > { %1017 = vmatprep.subr.msk.mxu1 %vm241_vm12, %v1647_v10  ;;  %1031 = vmatprep.subr.msk.mxu0 %vm241_vm12, %v1647_v10  ;;  %v1676_v24 = vsub.f32 %v243_v16, %v243_v16  ;;  %v341_v25 = vsub.f32 %v1554_v45, %v340_v17  ;;  %v1067_v26 = vpack.c.bf16 %v360_v62, %v348_v61  ;;  %v364_v29 = vand.u32 4294901760, %v1590_v57 }
  0x60   : > { %v353_v27 = vsub.f32 %v1579_v54, %v352_v22  ;;  %v1101_v28 = vpack.c.bf16 %v352_v22, %v340_v17  ;;  %v376_v30 = vand.u32 4294901760, %v1600_v59  ;;  %v1103_v32 = vpack.c.bf16 %v358_v47, %v346_v46 }
  0x61   : > { %v342_v31 = vand.u32 4294901760, %v341_v25  ;;  %v371_v34 = vsub.f32 %v1577_v53, %v370_v63  ;;  %v383_v35 = vsub.f32 %v1605_v60, %v382_v3  ;;  %v365_v37 = vsub.f32 %v1590_v57, %v364_v29 }
  0x62   : > { %1018 = vmatpush1.msk.msra.mxu1 %vm241_vm12, %v1650_v12  ;;  %1032 = vmatpush1.msk.msra.mxu0 %vm241_vm12, %v1650_v12  ;;  %v354_v36 = vand.u32 4294901760, %v353_v27  ;;  %v377_v41 = vsub.f32 %v1600_v59, %v376_v30  ;;  %v1105_v42 = vpack.c.bf16 %v376_v30, %v364_v29  ;;  %v388_v50 = vand.u32 4294901760, %v1623_v5 }
  0x63   : > { %1102 = vmatprep.subr.bf16.mxu0 %v1101_v28  ;;  %332 = vmatmul.mubr.f32.vlgmr.msra.gmra.mrb[0].mxu1 %v331_v49  ;;  %v372_v46 = vand.u32 4294901760, %v371_v34  ;;  %v384_v47 = vand.u32 4294901760, %v383_v35  ;;  %v400_v51 = vand.u32 4294901760, %v1659_v18  ;;  %v366_v55 = vand.u32 4294901760, %v365_v37 }
  0x64   : > { %v1065_v52 = vpack.c.bf16 %v354_v36, %v342_v31  ;;  %663 = vmatmul.mubr.f32.vlgmr.msra.gmra.mrb[0].mxu0 %v329_v21  ;;  %v378_v56 = vand.u32 4294901760, %v377_v41  ;;  %v395_v61 = vsub.f32 %v1644_v9, %v394_v19  ;;  %472 = vmatprep.mubr.f32.mxu1 %v1350_v1  ;;  %v1107_v33 = vpack.c.bf16 %v382_v3, %v370_v63 }
  0x65   : > { %1104 = vmatpush1.bf16.msra.mxu0 %v1103_v32  ;;  %v1071_v62 = vpack.c.bf16 %v384_v47, %v372_v46  ;;  %v389_v49 = vsub.f32 %v1623_v5, %v388_v50  ;;  %v401_v0 = vsub.f32 %v1659_v18, %v400_v51  ;;  %v1109_v6 = vpack.c.bf16 %v400_v51, %v388_v50 }
  0x66   : > { %1066 = vmatprep.subr.bf16.mxu1 %v1065_v52  ;;  %v1069_v4 = vpack.c.bf16 %v378_v56, %v366_v55  ;;  %1106 = vmatprep.subr.bf16.mxu0 %v1105_v42  ;;  %v396_v21 = vand.u32 4294901760, %v395_v61  ;;  %v407_v7 = vsub.f32 %v1652_v13, %v406_v23  ;;  %v412_v17 = vand.u32 4294901760, %v1668_v20 }
  0x67   : > { %1068 = vmatpush1.bf16.msra.mxu1 %v1067_v26  ;;  %v390_v14 = vand.u32 4294901760, %v389_v49  ;;  %v402_v16 = vand.u32 4294901760, %v401_v0  ;;  %v418_v22 = vand.u32 4294901760, %v1676_v24  ;;  %775 = vmatprep.mubr.f32.mxu0 %v1350_v1  ;;  %v1111_v25 = vpack.c.bf16 %v406_v23, %v394_v19 }
  0x68   : > { %1070 = vmatprep.subr.bf16.mxu1 %v1069_v4  ;;  %v408_v63 = vand.u32 4294901760, %v407_v7  ;;  %v413_v27 = vsub.f32 %v1668_v20, %v412_v17  ;;  %v1077_v31 = vpack.c.bf16 %v1579_v54, %v1554_v45  ;;  %v1079_v19 = vpack.c.bf16 %v1543_v40, %v1541_v39 }
  0x69   : > { %1108 = vmatpush1.bf16.msra.mxu0 %v1107_v33  ;;  %v1073_v3 = vpack.c.bf16 %v402_v16, %v390_v14  ;;  %v419_v26 = vsub.f32 %v1676_v24, %v418_v22  ;;  %v1081_v23 = vpack.c.bf16 %v1600_v59, %v1590_v57  ;;  %v1083_v39 = vpack.c.bf16 %v1605_v60, %v1577_v53 }
  0x6a   : > { %1110 = vmatprep.subr.bf16.mxu0 %v1109_v6  ;;  %v1075_v28 = vpack.c.bf16 %v408_v63, %v396_v21  ;;  %v414_v29 = vand.u32 4294901760, %v413_v27  ;;  %v1085_v40 = vpack.c.bf16 %v1659_v18, %v1623_v5  ;;  %v1087_v38 = vpack.c.bf16 %v1652_v13, %v1644_v9 }
  0x6b   : > { %1072 = vmatpush1.bf16.msra.mxu1 %v1071_v62  ;;  %v420_v30 = vand.u32 4294901760, %v419_v26 }
  0x6c   : > { %1074 = vmatprep.subr.bf16.mxu1 %v1073_v3 }
  0x6d   : > { %1112 = vmatpush1.bf16.msra.mxu0 %v1111_v25 }
  0x6e   : > { %720 = vmatprep.subr.mxu0 %v412_v17 }
  0x6f   : > { %1076 = vmatpush1.bf16.msra.mxu1 %v1075_v28 }
  0x70   : > { %415 = vmatprep.subr.mxu1 %v414_v29 }
  0x71   : > { %724 = vmatpush1.msra.mxu0 %v418_v22 }
  0x72   : > { %1114 = vmatprep.subr.msk.bf16.mxu0 %vm1547_vm9, %v1351_v44  ;;  %777 = vmatmul.mubr.f32.vlgmr.msra.gmra.mrb[0].mxu0 %v1501_v11 }
  0x73   : > { %421 = vmatpush1.msra.mxu1 %v420_v30  ;;  %1116 = vmatpush1.bf16.msk.msra.mxu0 %vm1537_vm8, %v1351_v44 }
  0x74   : > { %1078 = vmatprep.subr.bf16.mxu1 %v1077_v31  ;;  %474 = vmatmul.mubr.f32.vlgmr.msra.gmra.mrb[0].mxu1 %v1501_v11 }
  0x75   : > { %1080 = vmatpush1.bf16.msra.mxu1 %v1079_v19  ;;  %1118 = vmatprep.subr.msk.bf16.mxu0 %vm1561_vm13, %v1351_v44 }
  0x76   : > { %1082 = vmatprep.subr.bf16.mxu1 %v1081_v23  ;;  %572 = vmatprep.mubr.f32.mxu1 %v1350_v1 }
  0x77   : > { %1120 = vmatpush1.bf16.msk.msra.mxu0 %vm1596_vm14, %v1351_v44  ;;  %861 = vmatprep.mubr.f32.mxu0 %v1350_v1 }
  0x78   : > { %1122 = vmatprep.subr.msk.bf16.mxu0 %vm1611_vm1, %v1351_v44 }
  0x79   : > { %1084 = vmatpush1.bf16.msra.mxu1 %v1083_v39 }
  0x7a   : > { %1086 = vmatprep.subr.bf16.mxu1 %v1085_v40 }
  0x7b   : > { %1124 = vmatpush1.bf16.msk.msra.mxu0 %vm1640_vm6, %v1351_v44 }
  0x7c   : > { %1045 = vmatprep.subr.msk.mxu0 %vm241_vm12, %v1647_v10 }
  0x7d   : > { %1088 = vmatpush1.bf16.msra.mxu1 %v1087_v38 }
  0x7e   : > { %518 = vmatprep.subr.mxu1 %v1668_v20 }
  0x7f   : > { %1046 = vmatpush1.msk.msra.mxu0 %vm241_vm12, %v1650_v12 }
  0x80   : > { %863 = vmatmul.mubr.f32.vlgmr.msra.gmra.mrb[0].mxu0 %v1501_v11 }
  0x81   : > { %521 = vmatpush1.msra.mxu1 %v1676_v24 }
  0x82   : > { %575 = vmatmul.mubr.f32.vlgmr.msra.gmra.mrb[0].mxu1 %v1504_v15 }
 0x153   : > { %v864_v1 = vpop.f32.mrb[0].mxu0 }
 0x154   : > { %v866_v43 = vpop.f32.mrb[1].mxu0 }
 0x155   : > { %v576_v44 = vpop.f32.mrb[0].mxu1 }
 0x156   : > { %v1125_v45 = vadd.f32 %v864_v1, %v576_v44  ;;  %v578_v48 = vpop.f32.mrb[1].mxu1 }
 0x157   : > { %v1126_v53 = vadd.f32 %v866_v43, %v578_v48 }
 0x158   : > { %869 = vst [vmem:[%s158_s29] sm:$0xff] %v1125_v45 }
 0x159   : > { %870 = vst [vmem:[%s158_s29 + $0x8] sm:$0xff] %v1126_v53 }
 0x15a   : > { %1262 = shalt.err (!%p1259_p3)
}
 0x15b   : > { %s1263_s14 = scalar_lea.hbm %s1762_s4, 256  ;;  %s1267_s21 = scalar_lea.hbm %s1817_s1, 2048 }
 0x15c   : > { %p1264_p10 = scmp.ne.s32.totalorder %s1762_s4, %s1263_s14  ;;  %p1268_p2 = scmp.lt.u32.totalorder %s1762_s4, %s1817_s1 }
 0x15d   : > { %p1269_p5 = scmp.lt.u32.totalorder %s1267_s21, %s1263_s14  ;;  %p1271_p8 = scmp.lt.u32.totalorder %s1263_s14, %s1762_s4 }
 0x15e   : > { %p1265_p11 = pnand %p1264_p10, %p1840_p12 }
 0x15f   : > { %p1270_p9 = por %p1269_p5, %p1268_p2 }
 0x160   : > { %p1266_p1 = pneg %p1265_p11 }
 0x161   : > { %p1272_p0 = por %p1271_p8, %p1270_p9 }
 0x163   : > { %p1273_p7 = pnand %p1272_p0, %p1266_p1 }
 0x165   : > { %1276 = shalt.err (!%p1273_p7)
}
 0x166   : > { %1141 = dma.vmem_to_hbm [thread:$0]  (%p1840_p12), %s1764_s30, 256, %s1762_s4, %s872_s9  }
 0x167 PF: > { %p1152_p13 = scmp.ge.s32.totalorder %s1347_s13, 2  ;;  %s902_s19 = sand.u32 1, %s1319_s6  }
 0x168   : > { %p1841_p4 = scmp.ne.s32.totalorder %s1822_s25, 0  ;;  %s903_s28 = scalar_lea.sflag [#allocation4], %s902_s19 }
 0x16a   : > { %p1148_p6 = pnand %p1152_p13, %p1841_p4 }
 0x16c   : > { %1314 = dma.done.wait (!%p1148_p6), %s903_s28, 256  }
 0x16d   : > { %1316 = vsyncadd (!%p1148_p6), %s903_s28, 4294967040  ;;  %s17_s13 = sadd.s32 1, %s1347_s13   ;;  %s1842_s6 = smov %s1323_s7 }
 0x16e   : > { %p14_p3 = scmp.ge.s32.totalorder %s17_s13, 10   ;;  %s1843_s7 = smov %s1327_s8 }
 0x16f   : > { %s1844_s8 = smov %s1441_s27  ;;  %s1845_s9 = smov %s1339_s11 }
 0x170   : > { %s1846_s10 = smov %s1343_s12  ;;  %s1847_s11 = smov %s1850_s16 }
 0x171   : > { %s1848_s12 = smov %s1854_s17  ;;  %16 = sbr.rel (!%p14_p3) target bundleno = 7 (0x7), region = 69 }
 0x178   :  { %908 = vsyncpa [#allocation3], 1 }
 0x179   :  { %910 = vsyncpa [#allocation3 + $0x1], 1 }
 0x17a   :  { %911 = vsyncpa [#allocation4], 1 }
 0x17b   :  { %913 = vsyncpa [#allocation4 + $0x1], 1 }

</bundles_post_ra>
